<compile_context>
chip_gen: v5e
topology: v5e:2x2
jax: 0.10.0
libtpu: 0.0.40
codegen_flags: <defaults>
</compile_context>

<pallas_src>
import jax
import jax.numpy as jnp
from jax.experimental import pallas as pl
from jax.experimental.pallas import tpu as pltpu


_LANE = 128
# Only force a >=2-step grid (for v7x dual-TC sharding) above this many bytes.
_SPLIT_THRESHOLD_BYTES = 1 * 1024 * 1024


def _transpose_last_kernel(x_ref, o_ref):
    # x tile: (..., C_TILE, T_TILE)  ->  o tile: (..., T_TILE, C_TILE)
    # TODO(synk): for packed bf16/int8 on v5e, if bundle dumps show the XLU /
    # single vst slot saturating before HBM, switch this body to an MXU
    # identity-matmul transpose or a pltpu.bitcast 32-bit pair transpose.
    o_ref[...] = jnp.swapaxes(x_ref[...], -2, -1)


def _vmem_capacity_bytes():
    try:
        info = pltpu.get_tpu_info()
        cap = getattr(info, "vmem_capacity_bytes", None)
        if cap:
            return int(cap)
    except Exception:
        pass
    return 64 * 1024 * 1024            # conservative default (v7x per-TC VMEM)


def _is_v5_device():
    try:
        return "v5" in jax.devices()[0].device_kind.lower()
    except Exception:
        return False


def _round_down_lane(n):
    return (n // _LANE) * _LANE


def _round_up_lane(n):
    return ((n + _LANE - 1) // _LANE) * _LANE


def _make_in_spec(block, index_map, triple_buffer):
    if triple_buffer:
        try:
            return pl.BlockSpec(block, index_map, pipeline_mode=pl.Buffered(3))
        except TypeError:
            pass   # pipeline_mode not available in this JAX build: default 2-deep
    return pl.BlockSpec(block, index_map)


def _choose_tiles(B, C, T, itemsize, budget, min_step_bytes, n_bufs):
    """Pick (b_tile, c_tile, t_tile) for the (B, C, T) -> (B, T, C) transpose.

    Caller guarantees C % 128 == 0.  Always succeeds: C is tiled when needed
    instead of falling back to XLA.
    """
    per_elem = n_bufs * itemsize
    min_t = T if T <= _LANE else _LANE

    # 1) c_tile: full C if a minimal-width T tile fits the budget, else the
    #    largest lane multiple that does (adds a C grid axis for huge C).
    if per_elem * C * min_t <= budget:
        c_tile = C
    else:
        c_tile = _round_down_lane(budget // (per_elem * min_t))
        c_tile = max(_LANE, min(c_tile, C))

    # 2) t_tile: prefer the full last dim (fully contiguous per-batch input
    #    DMA), else the largest lane multiple that fits the budget.
    if per_elem * c_tile * T <= budget:
        t_tile = T
    else:
        t_tile = _round_down_lane(budget // (per_elem * c_tile))
        t_tile = max(_LANE, min(t_tile, T))

    # 3) b_tile: pack batches so each grid step moves >= min_step_bytes
    #    (amortizes the ~0.35 us per-step pipeline overhead).
    step_bytes = c_tile * t_tile * itemsize
    b_tile = 1
    if step_bytes < min_step_bytes and B > 1:
        want = max(1, min_step_bytes // max(step_bytes, 1))
        fit = max(1, budget // max(n_bufs * step_bytes, 1))
        b_tile = int(min(B, want, fit))

    # 4) Guarantee >= 2 parallel grid steps for non-trivial tensors so both
    #    v7x TensorCores can be used.
    def n_steps(bt, ct, tt):
        return pl.cdiv(B, bt) * pl.cdiv(C, ct) * pl.cdiv(T, tt)

    total_bytes = B * C * T * itemsize
    if total_bytes >= _SPLIT_THRESHOLD_BYTES and n_steps(b_tile, c_tile, t_tile) < 2:
        if B >= 2:
            b_tile = (B + 1) // 2
        elif T > _LANE:
            half_t = _round_up_lane((T + 1) // 2)
            if half_t < T:
                t_tile = half_t
        if n_steps(b_tile, c_tile, t_tile) < 2 and C >= 2 * _LANE:
            half_c = _round_up_lane((C + 1) // 2)
            if half_c < C:
                c_tile = half_c

    return b_tile, c_tile, t_tile


def transpose_last(x, deconstruct_idx=None, tranpose_dim=-2, *, _force_tiles=None):
    """Pallas implementation of TransposeLast.forward."""
    if deconstruct_idx is not None:
        x = x[deconstruct_idx]           # glue: tuple/int indexing in plain JAX

    x = jnp.asarray(x)
    nd = x.ndim
    if nd < 2:
        return x
    td = tranpose_dim % nd
    last = nd - 1
    if td == last:
        return x                         # transpose(-1, -1) is identity
    if td != nd - 2:
        # TODO(synk): non-default tranpose_dim is an arbitrary strided
        # permutation that BlockSpec can't express cleanly; use XLA glue.
        return jnp.swapaxes(x, td, last)

    lead = x.shape[:-2]
    C, T = x.shape[-2], x.shape[-1]
    B = 1
    for d in lead:
        B *= d
    itemsize = jnp.dtype(x.dtype).itemsize

    if B == 0 or C == 0 or T == 0:
        return jnp.swapaxes(x, -2, -1)

    # Lane-density guard: the OUTPUT last dim is C, so require C % 128 == 0 for
    # unmasked (lane-dense) vector stores.
    # TODO(synk): for small / non-128-multiple C the right answer is to pad C or
    # fuse the transpose into the consumer kernel; a lane-sparse standalone
    # Pallas transpose loses to XLA's native transpose, so fall back here.
    if C < _LANE or C % _LANE != 0:
        return jnp.swapaxes(x, -2, -1)

    vmem_cap = _vmem_capacity_bytes()
    budget = min(vmem_cap // 4, 48 * 1024 * 1024)        # ~25% of VMEM capacity
    min_step = (2 * 1024 * 1024) if vmem_cap <= 96 * 1024 * 1024 else (1 * 1024 * 1024)
    is_v5 = _is_v5_device()
    n_bufs = 5 if is_v5 else 4      # (2-or-3 input + 2 output) pipeline buffers

    if _force_tiles is not None:
        b_tile, c_tile, t_tile = _force_tiles
    else:
        b_tile, c_tile, t_tile = _choose_tiles(
            B, C, T, itemsize, budget, min_step, n_bufs)

    x3 = x.reshape(B, C, T)

    # Squeeze the leading block dim out of the kernel view when it is 1 so the
    # body is a clean 2-D (C_TILE, T_TILE) -> (T_TILE, C_TILE) XLU transpose.
    if b_tile == 1:
        in_block = (pl.Squeezed(), c_tile, t_tile)
        out_block = (pl.Squeezed(), t_tile, c_tile)
    else:
        in_block = (b_tile, c_tile, t_tile)
        out_block = (b_tile, t_tile, c_tile)

    grid = (pl.cdiv(B, b_tile), pl.cdiv(C, c_tile), pl.cdiv(T, t_tile))

    # Triple-buffer the input on v5-class chips when input DMAs are strided
    # (t_tile < T) and rows are long (large C): near-zero compute per tile means
    # the pipeline is pure DMA-in -> DMA-out, so a third buffer hides DMA jitter.
    use_triple_in = is_v5 and (t_tile < T) and (c_tile * itemsize >= 2048)

    in_spec = _make_in_spec(in_block, lambda b, c, t: (b, c, t), use_triple_in)
    out_spec = pl.BlockSpec(out_block, lambda b, c, t: (b, t, c))

    tile_bytes = b_tile * c_tile * t_tile * itemsize
    footprint = ((3 if use_triple_in else 2) + 2) * tile_bytes
    vmem_limit = int(min(max(8 * 1024 * 1024, footprint + (2 << 20)),
                         vmem_cap - (2 << 20)))

    out3 = pl.pallas_call(
        _transpose_last_kernel,
        out_shape=jax.ShapeDtypeStruct((B, T, C), x.dtype),
        grid_spec=pltpu.PrefetchScalarGridSpec(
            num_scalar_prefetch=0,
            grid=grid,
            in_specs=[in_spec],
            out_specs=out_spec,
        ),
        compiler_params=pltpu.CompilerParams(
            dimension_semantics=("parallel", "parallel", "parallel"),
            vmem_limit_bytes=vmem_limit,
        ),
        cost_estimate=pl.CostEstimate(
            flops=0,
            transcendentals=0,
            bytes_accessed=2 * B * C * T * itemsize,
        ),
    )(x3)

    return out3.reshape(*lead, T, C)


if __name__ == "__main__":
    key = jax.random.PRNGKey(0)
    k1, k2, k3, k4, k5, k6 = jax.random.split(key, 6)

    # 1) Standard Pallas path: small (C, T) plane -> batch packing (b_tile > 1).
    x1 = jax.random.normal(k1, (2, 128, 256), dtype=jnp.float32)
    y1 = jax.block_until_ready(transpose_last(x1))
    assert y1.shape == (2, 256, 128), y1.shape
    assert jnp.array_equal(y1, jnp.swapaxes(x1, -2, -1)), "mismatch (standard)"

    # 2) Forced small T tile: T % t_tile != 0 edge masking + squeezed leading dim.
    x2 = jax.random.normal(k2, (2, 128, 200), dtype=jnp.float32)
    y2 = jax.block_until_ready(transpose_last(x2, _force_tiles=(1, 128, 128)))
    assert jnp.array_equal(y2, jnp.swapaxes(x2, -2, -1)), "mismatch (T edge)"

    # 3) Forced b_tile=2 with B=3: B % b_tile != 0 edge masking on the batch axis.
    x3 = jax.random.normal(k3, (3, 128, 384), dtype=jnp.float32)
    y3 = jax.block_until_ready(transpose_last(x3, _force_tiles=(2, 128, 128)))
    assert jnp.array_equal(y3, jnp.swapaxes(x3, -2, -1)), "mismatch (B edge)"

    # 4) Forced C tiling (third grid axis over C).
    x4 = jax.random.normal(k4, (1, 256, 256), dtype=jnp.float32)
    y4 = jax.block_until_ready(transpose_last(x4, _force_tiles=(1, 128, 128)))
    assert jnp.array_equal(y4, jnp.swapaxes(x4, -2, -1)), "mismatch (C tiling)"

    # 5) bf16 input on the Pallas path.
    x5 = jax.random.normal(k5, (2, 128, 256)).astype(jnp.bfloat16)
    y5 = jax.block_until_ready(transpose_last(x5))
    assert jnp.array_equal(y5, jnp.swapaxes(x5, -2, -1)), "mismatch (bf16)"

    # 6) Tiny-C fallback + deconstruct_idx glue (module defaults path).
    x6 = jax.random.normal(k6, (2, 4, 16), dtype=jnp.float32)
    y6 = jax.block_until_ready(transpose_last((x6, x6 * 2.0), deconstruct_idx=1))
    assert jnp.array_equal(y6, jnp.swapaxes(x6 * 2.0, -2, -1)), "mismatch (fallback)"

    # 7) Non-default tranpose_dim (XLA glue path).
    x7 = jax.random.normal(k1, (2, 4, 8, 16), dtype=jnp.float32)
    y7 = jax.block_until_ready(transpose_last(x7, tranpose_dim=1))
    assert jnp.array_equal(y7, jnp.swapaxes(x7, 1, -1)), "mismatch (tranpose_dim)"

    print("KERNEL_OK")
</pallas_src>

<mosaic_0001>
module attributes {stable_mosaic.version = 11 : i64} {
  func.func @_transpose_last_kernel(%arg0: i32, %arg1: i32, %arg2: i32, %arg3: memref<2x128x256xf32, #tpu.memory_space<vmem>>, %arg4: memref<2x256x128xf32, #tpu.memory_space<vmem>>) attributes {dimension_semantics = [#tpu.dimension_semantics<parallel>, #tpu.dimension_semantics<parallel>, #tpu.dimension_semantics<parallel>], iteration_bounds = array<i64: 1, 1, 1>, scalar_prefetch = 0 : i64, scratch_operands = 0 : i64, tpu.core_type = #tpu.core_type<tc>, window_params = [{transform_indices = @transform_0, window_bounds = array<i64: 2, 128, 256>}, {transform_indices = @transform_1, window_bounds = array<i64: 2, 256, 128>}]} {
    %c0 = arith.constant 0 : index
    %c0_0 = arith.constant 0 : index
    %c0_1 = arith.constant 0 : index
    %0 = vector.load %arg3[%c0, %c0_0, %c0_1] : memref<2x128x256xf32, #tpu.memory_space<vmem>>, vector<2x128x256xf32>
    %1 = tpu.transpose %0, [0, 2, 1] : vector<2x128x256xf32> -> vector<2x256x128xf32>
    %c0_2 = arith.constant 0 : index
    %c0_3 = arith.constant 0 : index
    %c0_4 = arith.constant 0 : index
    %2 = vector.load %arg4[%c0_2, %c0_3, %c0_4] : memref<2x256x128xf32, #tpu.memory_space<vmem>>, vector<2x256x128xf32>
    tpu.vector_store %arg4[%c0_2, %c0_3, %c0_4], %1 {strides = array<i32>} : memref<2x256x128xf32, #tpu.memory_space<vmem>>, vector<2x256x128xf32>,
    return
  }
  func.func @transform_0(%arg0: i32, %arg1: i32, %arg2: i32) -> (i32, i32, i32) {
    %c0_i32 = arith.constant 0 : i32
    return %arg0, %arg1, %arg2 : i32, i32, i32
  }
  func.func @transform_1(%arg0: i32, %arg1: i32, %arg2: i32) -> (i32, i32, i32) {
    %c0_i32 = arith.constant 0 : i32
    return %arg0, %arg2, %arg1 : i32, i32, i32
  }
}

</mosaic_0001>

<bundles_post_ra>
// kernel: tpu_custom_call.1
= control target key start
LH: loop header
LB: loop body
LE: loop exit
PB: predicated region body
PF: predicated region fallthrough
CT: control target
= control target key end

     0   :  { %6 = vsyncpa [#allocation3], 0  ;;  %s380_s0 = inlined_call_operand.hbm [shape: f32[2,128,256], index: 0, kind: input, shape index: {}]   ;;  %s381_s1 = inlined_call_operand.hbm [shape: f32[2,256,128], index: 1, kind: output, shape index: {}]  }
   0x1   :  { %7 = vsyncpa [#allocation4], 0  ;;  %s12_s8 = sshll.u32 %s380_s0, 4  ;;  %s358_s9 = smov [#allocation2]   ;;  %s13_s8 = int_to_ptr.hbm [resolvable:$true] %s12_s8 }
   0x2   :  { %s14_s10 = sshll.u32 %s358_s9, 4  ;;  %s359_s11 = smov 256   ;;  %s15_s10 = int_to_ptr.vmem [resolvable:$true] %s14_s10 }
   0x3   :  { %s360_s12 = smov 16  }
   0x4   :  { %20 = dma.hbm_to_vmem [thread:$0]  %s13_s8, 8192, %s15_s10, [#allocation3], %s359_s11, %s359_s11, %s360_s12  }
   0x5   :  { %354 = dma.done.wait [#allocation3], 8192  }
   0x6   :  { %355 = vsyncadd [#allocation3], 4294959104  ;;  %v25_v0 = vld [vmem:[#allocation2] sm:$0xff]  ;;  %v27_v1 = vld [vmem:[#allocation2 + $0x10] sm:$0xff]  ;;  %s361_s0 = smov [#allocation5]   ;;  %s287_s16 = sshll.u32 %s381_s1, 4  ;;  %s288_s16 = int_to_ptr.hbm [resolvable:$true] %s287_s16 }
   0x7   :  { %89 = vxpose.xlu0.b32.start [1/16] %v25_v0, 128  ;;  %v29_v2 = vld [vmem:[#allocation2 + $0x20] sm:$0xff]  ;;  %v31_v3 = vld [vmem:[#allocation2 + $0x30] sm:$0xff]  ;;  %v26_v12 = vld [vmem:[#allocation2 + $0x8] sm:$0xff]  ;;  %s285_s13 = sshll.u32 %s361_s0, 4  ;;  %s362_s17 = smov 128   ;;  %s286_s13 = int_to_ptr.vmem [resolvable:$true] %s285_s13 }
   0x8   :  { %v33_v4 = vld [vmem:[#allocation2 + $0x40] sm:$0xff]  ;;  %v35_v5 = vld [vmem:[#allocation2 + $0x50] sm:$0xff]  ;;  %121 = vxpose.xlu1.b32.start [1/16] %v26_v12, 128  ;;  %v28_v14 = vld [vmem:[#allocation2 + $0x18] sm:$0xff]  ;;  %s363_s18 = smov 8  }
   0x9   :  { %v37_v6 = vld [vmem:[#allocation2 + $0x60] sm:$0xff]  ;;  %v39_v7 = vld [vmem:[#allocation2 + $0x70] sm:$0xff]  ;;  %v30_v17 = vld [vmem:[#allocation2 + $0x28] sm:$0xff] }
   0xa   :  { %v41_v8 = vld [vmem:[#allocation2 + $0x80] sm:$0xff]  ;;  %v43_v9 = vld [vmem:[#allocation2 + $0x90] sm:$0xff]  ;;  %v32_v20 = vld [vmem:[#allocation2 + $0x38] sm:$0xff] }
   0xb   :  { %v45_v10 = vld [vmem:[#allocation2 + $0xa0] sm:$0xff]  ;;  %v47_v11 = vld [vmem:[#allocation2 + $0xb0] sm:$0xff]  ;;  %v34_v23 = vld [vmem:[#allocation2 + $0x48] sm:$0xff] }
   0xc   :  { %v49_v13 = vld [vmem:[#allocation2 + $0xc0] sm:$0xff]  ;;  %v51_v15 = vld [vmem:[#allocation2 + $0xd0] sm:$0xff]  ;;  %v58_v24 = vld [vmem:[#allocation2 + $0x108] sm:$0xff] }
   0xd   :  { %v57_v16 = vld [vmem:[#allocation2 + $0x100] sm:$0xff]  ;;  %v59_v19 = vld [vmem:[#allocation2 + $0x110] sm:$0xff]  ;;  %v60_v26 = vld [vmem:[#allocation2 + $0x118] sm:$0xff] }
   0xe   :  { %153 = vxpose.xlu2.b32.start [1/16] %v57_v16, 128  ;;  %v53_v18 = vld [vmem:[#allocation2 + $0xe0] sm:$0xff]  ;;  %v55_v21 = vld [vmem:[#allocation2 + $0xf0] sm:$0xff]  ;;  %v36_v27 = vld [vmem:[#allocation2 + $0x58] sm:$0xff] }
   0xf   :  { %90 = vxpose.xlu0.b32.cont [2/16] %v27_v1, 128  ;;  %v61_v22 = vld [vmem:[#allocation2 + $0x120] sm:$0xff]  ;;  %v63_v25 = vld [vmem:[#allocation2 + $0x130] sm:$0xff]  ;;  %v62_v29 = vld [vmem:[#allocation2 + $0x128] sm:$0xff] }
  0x10   :  { %122 = vxpose.xlu1.b32.cont [2/16] %v28_v14, 128  ;;  %v65_v28 = vld [vmem:[#allocation2 + $0x140] sm:$0xff]  ;;  %v38_v30 = vld [vmem:[#allocation2 + $0x68] sm:$0xff]  ;;  %v67_v31 = vld [vmem:[#allocation2 + $0x150] sm:$0xff] }
  0x11   :  { %v64_v32 = vld [vmem:[#allocation2 + $0x138] sm:$0xff]  ;;  %v69_v34 = vld [vmem:[#allocation2 + $0x160] sm:$0xff]  ;;  %v66_v35 = vld [vmem:[#allocation2 + $0x148] sm:$0xff] }
  0x12   :  { %v40_v33 = vld [vmem:[#allocation2 + $0x78] sm:$0xff]  ;;  %v42_v36 = vld [vmem:[#allocation2 + $0x88] sm:$0xff]  ;;  %v71_v37 = vld [vmem:[#allocation2 + $0x170] sm:$0xff] }
  0x13   :  { %v68_v39 = vld [vmem:[#allocation2 + $0x158] sm:$0xff]  ;;  %v73_v41 = vld [vmem:[#allocation2 + $0x180] sm:$0xff]  ;;  %v70_v43 = vld [vmem:[#allocation2 + $0x168] sm:$0xff] }
  0x14   :  { %v44_v40 = vld [vmem:[#allocation2 + $0x98] sm:$0xff]  ;;  %v46_v44 = vld [vmem:[#allocation2 + $0xa8] sm:$0xff]  ;;  %v75_v45 = vld [vmem:[#allocation2 + $0x190] sm:$0xff] }
  0x15   :  { %v72_v47 = vld [vmem:[#allocation2 + $0x178] sm:$0xff]  ;;  %v77_v49 = vld [vmem:[#allocation2 + $0x1a0] sm:$0xff]  ;;  %v74_v51 = vld [vmem:[#allocation2 + $0x188] sm:$0xff] }
  0x16   :  { %154 = vxpose.xlu2.b32.cont [2/16] %v59_v19, 128  ;;  %v48_v48 = vld [vmem:[#allocation2 + $0xb8] sm:$0xff]  ;;  %v50_v52 = vld [vmem:[#allocation2 + $0xc8] sm:$0xff]  ;;  %v79_v53 = vld [vmem:[#allocation2 + $0x1b0] sm:$0xff] }
  0x17   :  { %91 = vxpose.xlu0.b32.cont [3/16] %v29_v2, 128  ;;  %v76_v55 = vld [vmem:[#allocation2 + $0x198] sm:$0xff]  ;;  %v81_v57 = vld [vmem:[#allocation2 + $0x1c0] sm:$0xff]  ;;  %v78_v59 = vld [vmem:[#allocation2 + $0x1a8] sm:$0xff] }
  0x18   :  { %123 = vxpose.xlu1.b32.cont [3/16] %v30_v17, 128  ;;  %v52_v56 = vld [vmem:[#allocation2 + $0xd8] sm:$0xff]  ;;  %v54_v60 = vld [vmem:[#allocation2 + $0xe8] sm:$0xff]  ;;  %v83_v61 = vld [vmem:[#allocation2 + $0x1d0] sm:$0xff] }
  0x19   :  { %v80_v63 = vld [vmem:[#allocation2 + $0x1b8] sm:$0xff]  ;;  %v85_v1 = vld [vmem:[#allocation2 + $0x1e0] sm:$0xff] }
  0x1a   :  { %v56_v0 = vld [vmem:[#allocation2 + $0xf8] sm:$0xff] }
  0x1e   :  { %155 = vxpose.xlu2.b32.cont [3/16] %v61_v22, 128 }
  0x1f   :  { %92 = vxpose.xlu0.b32.cont [4/16] %v31_v3, 128  ;;  %v82_v3 = vld [vmem:[#allocation2 + $0x1c8] sm:$0xff] }
  0x20   :  { %124 = vxpose.xlu1.b32.cont [4/16] %v32_v20, 128 }
  0x26   :  { %156 = vxpose.xlu2.b32.cont [4/16] %v63_v25, 128 }
  0x27   :  { %93 = vxpose.xlu0.b32.cont [5/16] %v33_v4, 128  ;;  %v87_v4 = vld [vmem:[#allocation2 + $0x1f0] sm:$0xff] }
  0x28   :  { %125 = vxpose.xlu1.b32.cont [5/16] %v34_v23, 128 }
  0x2e   :  { %157 = vxpose.xlu2.b32.cont [5/16] %v65_v28, 128 }
  0x2f   :  { %94 = vxpose.xlu0.b32.cont [6/16] %v35_v5, 128 }
  0x30   :  { %126 = vxpose.xlu1.b32.cont [6/16] %v36_v27, 128 }
  0x36   :  { %158 = vxpose.xlu2.b32.cont [6/16] %v67_v31, 128 }
  0x37   :  { %95 = vxpose.xlu0.b32.cont [7/16] %v37_v6, 128  ;;  %v84_v6 = vld [vmem:[#allocation2 + $0x1d8] sm:$0xff] }
  0x38   :  { %127 = vxpose.xlu1.b32.cont [7/16] %v38_v30, 128 }
  0x3e   :  { %159 = vxpose.xlu2.b32.cont [7/16] %v69_v34, 128 }
  0x3f   :  { %96 = vxpose.xlu0.b32.cont [8/16] %v39_v7, 128 }
  0x40   :  { %128 = vxpose.xlu1.b32.cont [8/16] %v40_v33, 128 }
  0x46   :  { %160 = vxpose.xlu2.b32.cont [8/16] %v71_v37, 128 }
  0x47   :  { %97 = vxpose.xlu0.b32.cont [9/16] %v41_v8, 128  ;;  %v86_v8 = vld [vmem:[#allocation2 + $0x1e8] sm:$0xff] }
  0x48   :  { %129 = vxpose.xlu1.b32.cont [9/16] %v42_v36, 128 }
  0x4e   :  { %161 = vxpose.xlu2.b32.cont [9/16] %v73_v41, 128 }
  0x4f   :  { %98 = vxpose.xlu0.b32.cont [10/16] %v43_v9, 128 }
  0x50   :  { %130 = vxpose.xlu1.b32.cont [10/16] %v44_v40, 128 }
  0x56   :  { %162 = vxpose.xlu2.b32.cont [10/16] %v75_v45, 128 }
  0x57   :  { %99 = vxpose.xlu0.b32.cont [11/16] %v45_v10, 128  ;;  %v88_v10 = vld [vmem:[#allocation2 + $0x1f8] sm:$0xff] }
  0x58   :  { %131 = vxpose.xlu1.b32.cont [11/16] %v46_v44, 128 }
  0x5e   :  { %163 = vxpose.xlu2.b32.cont [11/16] %v77_v49, 128 }
  0x5f   :  { %100 = vxpose.xlu0.b32.cont [12/16] %v47_v11, 128 }
  0x60   :  { %132 = vxpose.xlu1.b32.cont [12/16] %v48_v48, 128 }
  0x66   :  { %164 = vxpose.xlu2.b32.cont [12/16] %v79_v53, 128 }
  0x67   :  { %101 = vxpose.xlu0.b32.cont [13/16] %v49_v13, 128 }
  0x68   :  { %133 = vxpose.xlu1.b32.cont [13/16] %v50_v52, 128 }
  0x6e   :  { %165 = vxpose.xlu2.b32.cont [13/16] %v81_v57, 128 }
  0x6f   :  { %102 = vxpose.xlu0.b32.cont [14/16] %v51_v15, 128 }
  0x70   :  { %134 = vxpose.xlu1.b32.cont [14/16] %v52_v56, 128 }
  0x76   :  { %166 = vxpose.xlu2.b32.cont [14/16] %v83_v61, 128 }
  0x77   :  { %103 = vxpose.xlu0.b32.cont [15/16] %v53_v18, 128 }
  0x78   :  { %135 = vxpose.xlu1.b32.cont [15/16] %v54_v60, 128 }
  0x7e   :  { %167 = vxpose.xlu2.b32.cont [15/16] %v85_v1, 128 }
  0x7f   :  { %104 = vxpose.xlu0.b32.end [16/16] %v55_v21, 128 }
  0x80   :  { %136 = vxpose.xlu1.b32.end [16/16] %v56_v0, 128 }
  0x86   :  { %168 = vxpose.xlu2.b32.end [16/16] %v87_v4, 128 }
  0x87   :  { %185 = vxpose.xlu0.b32.start [1/16] %v58_v24, 128 }
  0x8f   :  { %186 = vxpose.xlu0.b32.cont [2/16] %v60_v26, 128 }
  0x97   :  { %187 = vxpose.xlu0.b32.cont [3/16] %v62_v29, 128 }
  0x9f   :  { %188 = vxpose.xlu0.b32.cont [4/16] %v64_v32, 128 }
  0xa7   :  { %189 = vxpose.xlu0.b32.cont [5/16] %v66_v35, 128  ;;  %v169_v12 = vpop.trf.xlu2 }
  0xa8   :  { %249 = vst [vmem:[#allocation5 + $0x100] sm:$0xff] %v169_v12 }
  0xab   :  { %v105_v38 = vpop.trf.xlu0 }
  0xac   :  { %217 = vst [vmem:[#allocation5] sm:$0xff] %v105_v38  ;;  %v137_v13 = vpop.trf.xlu1 }
  0xad   :  { %233 = vst [vmem:[#allocation5 + $0x80] sm:$0xff] %v137_v13 }
  0xaf   :  { %190 = vxpose.xlu0.b32.cont [6/16] %v68_v39, 128  ;;  %v170_v15 = vpop.trf.xlu2 }
  0xb0   :  { %250 = vst [vmem:[#allocation5 + $0x108] sm:$0xff] %v170_v15 }
  0xb3   :  { %v106_v42 = vpop.trf.xlu0 }
  0xb4   :  { %218 = vst [vmem:[#allocation5 + $0x8] sm:$0xff] %v106_v42  ;;  %v138_v16 = vpop.trf.xlu1 }
  0xb5   :  { %234 = vst [vmem:[#allocation5 + $0x88] sm:$0xff] %v138_v16 }
  0xb7   :  { %191 = vxpose.xlu0.b32.cont [7/16] %v70_v43, 128  ;;  %v171_v18 = vpop.trf.xlu2 }
  0xb8   :  { %251 = vst [vmem:[#allocation5 + $0x110] sm:$0xff] %v171_v18 }
  0xbb   :  { %v107_v46 = vpop.trf.xlu0 }
  0xbc   :  { %219 = vst [vmem:[#allocation5 + $0x10] sm:$0xff] %v107_v46  ;;  %v139_v19 = vpop.trf.xlu1 }
  0xbd   :  { %235 = vst [vmem:[#allocation5 + $0x90] sm:$0xff] %v139_v19 }
  0xbf   :  { %192 = vxpose.xlu0.b32.cont [8/16] %v72_v47, 128  ;;  %v172_v21 = vpop.trf.xlu2 }
  0xc0   :  { %252 = vst [vmem:[#allocation5 + $0x118] sm:$0xff] %v172_v21 }
  0xc3   :  { %v108_v50 = vpop.trf.xlu0 }
  0xc4   :  { %220 = vst [vmem:[#allocation5 + $0x18] sm:$0xff] %v108_v50  ;;  %v140_v22 = vpop.trf.xlu1 }
  0xc5   :  { %236 = vst [vmem:[#allocation5 + $0x98] sm:$0xff] %v140_v22 }
  0xc7   :  { %193 = vxpose.xlu0.b32.cont [9/16] %v74_v51, 128  ;;  %v173_v24 = vpop.trf.xlu2 }
  0xc8   :  { %253 = vst [vmem:[#allocation5 + $0x120] sm:$0xff] %v173_v24 }
  0xcb   :  { %v109_v54 = vpop.trf.xlu0 }
  0xcc   :  { %221 = vst [vmem:[#allocation5 + $0x20] sm:$0xff] %v109_v54  ;;  %v141_v25 = vpop.trf.xlu1 }
  0xcd   :  { %237 = vst [vmem:[#allocation5 + $0xa0] sm:$0xff] %v141_v25 }
  0xcf   :  { %194 = vxpose.xlu0.b32.cont [10/16] %v76_v55, 128  ;;  %v174_v27 = vpop.trf.xlu2 }
  0xd0   :  { %254 = vst [vmem:[#allocation5 + $0x128] sm:$0xff] %v174_v27 }
  0xd3   :  { %v110_v58 = vpop.trf.xlu0 }
  0xd4   :  { %222 = vst [vmem:[#allocation5 + $0x28] sm:$0xff] %v110_v58  ;;  %v142_v28 = vpop.trf.xlu1 }
  0xd5   :  { %238 = vst [vmem:[#allocation5 + $0xa8] sm:$0xff] %v142_v28 }
  0xd7   :  { %195 = vxpose.xlu0.b32.cont [11/16] %v78_v59, 128  ;;  %v175_v30 = vpop.trf.xlu2 }
  0xd8   :  { %255 = vst [vmem:[#allocation5 + $0x130] sm:$0xff] %v175_v30 }
  0xdb   :  { %v111_v62 = vpop.trf.xlu0 }
  0xdc   :  { %223 = vst [vmem:[#allocation5 + $0x30] sm:$0xff] %v111_v62  ;;  %v143_v31 = vpop.trf.xlu1 }
  0xdd   :  { %239 = vst [vmem:[#allocation5 + $0xb0] sm:$0xff] %v143_v31 }
  0xdf   :  { %196 = vxpose.xlu0.b32.cont [12/16] %v80_v63, 128  ;;  %v176_v33 = vpop.trf.xlu2 }
  0xe0   :  { %256 = vst [vmem:[#allocation5 + $0x138] sm:$0xff] %v176_v33 }
  0xe3   :  { %v112_v2 = vpop.trf.xlu0 }
  0xe4   :  { %224 = vst [vmem:[#allocation5 + $0x38] sm:$0xff] %v112_v2  ;;  %v144_v34 = vpop.trf.xlu1 }
  0xe5   :  { %240 = vst [vmem:[#allocation5 + $0xb8] sm:$0xff] %v144_v34 }
  0xe7   :  { %197 = vxpose.xlu0.b32.cont [13/16] %v82_v3, 128  ;;  %v177_v36 = vpop.trf.xlu2 }
  0xe8   :  { %257 = vst [vmem:[#allocation5 + $0x140] sm:$0xff] %v177_v36 }
  0xeb   :  { %v113_v5 = vpop.trf.xlu0 }
  0xec   :  { %225 = vst [vmem:[#allocation5 + $0x40] sm:$0xff] %v113_v5  ;;  %v145_v37 = vpop.trf.xlu1 }
  0xed   :  { %241 = vst [vmem:[#allocation5 + $0xc0] sm:$0xff] %v145_v37 }
  0xef   :  { %198 = vxpose.xlu0.b32.cont [14/16] %v84_v6, 128  ;;  %v178_v39 = vpop.trf.xlu2 }
  0xf0   :  { %258 = vst [vmem:[#allocation5 + $0x148] sm:$0xff] %v178_v39 }
  0xf3   :  { %v114_v7 = vpop.trf.xlu0 }
  0xf4   :  { %226 = vst [vmem:[#allocation5 + $0x48] sm:$0xff] %v114_v7  ;;  %v146_v40 = vpop.trf.xlu1 }
  0xf5   :  { %242 = vst [vmem:[#allocation5 + $0xc8] sm:$0xff] %v146_v40 }
  0xf7   :  { %199 = vxpose.xlu0.b32.cont [15/16] %v86_v8, 128  ;;  %v179_v42 = vpop.trf.xlu2 }
  0xf8   :  { %259 = vst [vmem:[#allocation5 + $0x150] sm:$0xff] %v179_v42 }
  0xfb   :  { %v115_v9 = vpop.trf.xlu0 }
  0xfc   :  { %227 = vst [vmem:[#allocation5 + $0x50] sm:$0xff] %v115_v9  ;;  %v147_v43 = vpop.trf.xlu1 }
  0xfd   :  { %243 = vst [vmem:[#allocation5 + $0xd0] sm:$0xff] %v147_v43 }
  0xff   :  { %200 = vxpose.xlu0.b32.end [16/16] %v88_v10, 128  ;;  %v180_v45 = vpop.trf.xlu2 }
 0x100   :  { %260 = vst [vmem:[#allocation5 + $0x158] sm:$0xff] %v180_v45 }
 0x103   :  { %v116_v11 = vpop.trf.xlu0 }
 0x104   :  { %228 = vst [vmem:[#allocation5 + $0x58] sm:$0xff] %v116_v11  ;;  %v148_v46 = vpop.trf.xlu1 }
 0x105   :  { %244 = vst [vmem:[#allocation5 + $0xd8] sm:$0xff] %v148_v46 }
 0x107   :  { %v181_v48 = vpop.trf.xlu2 }
 0x108   :  { %261 = vst [vmem:[#allocation5 + $0x160] sm:$0xff] %v181_v48 }
 0x10b   :  { %v117_v14 = vpop.trf.xlu0 }
 0x10c   :  { %229 = vst [vmem:[#allocation5 + $0x60] sm:$0xff] %v117_v14  ;;  %v149_v49 = vpop.trf.xlu1 }
 0x10d   :  { %245 = vst [vmem:[#allocation5 + $0xe0] sm:$0xff] %v149_v49 }
 0x10f   :  { %v182_v51 = vpop.trf.xlu2 }
 0x110   :  { %262 = vst [vmem:[#allocation5 + $0x168] sm:$0xff] %v182_v51 }
 0x113   :  { %v118_v17 = vpop.trf.xlu0 }
 0x114   :  { %230 = vst [vmem:[#allocation5 + $0x68] sm:$0xff] %v118_v17  ;;  %v150_v52 = vpop.trf.xlu1 }
 0x115   :  { %246 = vst [vmem:[#allocation5 + $0xe8] sm:$0xff] %v150_v52 }
 0x117   :  { %v183_v54 = vpop.trf.xlu2 }
 0x118   :  { %263 = vst [vmem:[#allocation5 + $0x170] sm:$0xff] %v183_v54 }
 0x11b   :  { %v119_v20 = vpop.trf.xlu0 }
 0x11c   :  { %231 = vst [vmem:[#allocation5 + $0x70] sm:$0xff] %v119_v20  ;;  %v151_v55 = vpop.trf.xlu1 }
 0x11d   :  { %247 = vst [vmem:[#allocation5 + $0xf0] sm:$0xff] %v151_v55 }
 0x11f   :  { %v184_v57 = vpop.trf.xlu2 }
 0x120   :  { %264 = vst [vmem:[#allocation5 + $0x178] sm:$0xff] %v184_v57 }
 0x123   :  { %v120_v23 = vpop.trf.xlu0 }
 0x124   :  { %232 = vst [vmem:[#allocation5 + $0x78] sm:$0xff] %v120_v23  ;;  %v152_v58 = vpop.trf.xlu1 }
 0x125   :  { %248 = vst [vmem:[#allocation5 + $0xf8] sm:$0xff] %v152_v58 }
 0x12b   :  { %v201_v26 = vpop.trf.xlu0 }
 0x12c   :  { %265 = vst [vmem:[#allocation5 + $0x180] sm:$0xff] %v201_v26 }
 0x133   :  { %v202_v29 = vpop.trf.xlu0 }
 0x134   :  { %266 = vst [vmem:[#allocation5 + $0x188] sm:$0xff] %v202_v29 }
 0x13b   :  { %v203_v32 = vpop.trf.xlu0 }
 0x13c   :  { %267 = vst [vmem:[#allocation5 + $0x190] sm:$0xff] %v203_v32 }
 0x143   :  { %v204_v35 = vpop.trf.xlu0 }
 0x144   :  { %268 = vst [vmem:[#allocation5 + $0x198] sm:$0xff] %v204_v35 }
 0x14b   :  { %v205_v38 = vpop.trf.xlu0 }
 0x14c   :  { %269 = vst [vmem:[#allocation5 + $0x1a0] sm:$0xff] %v205_v38 }
 0x153   :  { %v206_v41 = vpop.trf.xlu0 }
 0x154   :  { %270 = vst [vmem:[#allocation5 + $0x1a8] sm:$0xff] %v206_v41 }
 0x15b   :  { %v207_v44 = vpop.trf.xlu0 }
 0x15c   :  { %271 = vst [vmem:[#allocation5 + $0x1b0] sm:$0xff] %v207_v44 }
 0x163   :  { %v208_v47 = vpop.trf.xlu0 }
 0x164   :  { %272 = vst [vmem:[#allocation5 + $0x1b8] sm:$0xff] %v208_v47 }
 0x16b   :  { %v209_v50 = vpop.trf.xlu0 }
 0x16c   :  { %273 = vst [vmem:[#allocation5 + $0x1c0] sm:$0xff] %v209_v50 }
 0x173   :  { %v210_v53 = vpop.trf.xlu0 }
 0x174   :  { %274 = vst [vmem:[#allocation5 + $0x1c8] sm:$0xff] %v210_v53 }
 0x17b   :  { %v211_v56 = vpop.trf.xlu0 }
 0x17c   :  { %275 = vst [vmem:[#allocation5 + $0x1d0] sm:$0xff] %v211_v56 }
 0x183   :  { %v212_v59 = vpop.trf.xlu0 }
 0x184   :  { %276 = vst [vmem:[#allocation5 + $0x1d8] sm:$0xff] %v212_v59 }
 0x18b   :  { %v213_v60 = vpop.trf.xlu0 }
 0x18c   :  { %277 = vst [vmem:[#allocation5 + $0x1e0] sm:$0xff] %v213_v60 }
 0x193   :  { %v214_v61 = vpop.trf.xlu0 }
 0x194   :  { %278 = vst [vmem:[#allocation5 + $0x1e8] sm:$0xff] %v214_v61 }
 0x19b   :  { %v215_v62 = vpop.trf.xlu0 }
 0x19c   :  { %279 = vst [vmem:[#allocation5 + $0x1f0] sm:$0xff] %v215_v62 }
 0x1a3   :  { %v216_v63 = vpop.trf.xlu0 }
 0x1a4   :  { %280 = vst [vmem:[#allocation5 + $0x1f8] sm:$0xff] %v216_v63 }
 0x1a5   :  { %293 = dma.vmem_to_hbm [thread:$0]  %s286_s13, 8192, %s288_s16, [#allocation4], %s362_s17, %s362_s17, %s363_s18  }
 0x1a6   :  { %356 = dma.done.wait [#allocation4], 8192  }
 0x1a7   :  { %357 = vsyncadd [#allocation4], 4294959104 }
 0x1a8   :  { %298 = vsyncpa [#allocation3], 1 }
 0x1a9   :  { %299 = vsyncpa [#allocation4], 1 }

</bundles_post_ra>
